<compile_context>
chip_gen: v7x
topology: tpu7x:2x2x1
jax: 0.10.0
libtpu: 0.0.40
codegen_flags: <defaults>
</compile_context>

<pallas_src>
import math

import jax
import jax.numpy as jnp
import numpy as np
from jax.experimental import pallas as pl
from jax.experimental.pallas import tpu as pltpu

BN_EPS = 1e-5
HIDDEN = 64
NGATES = 4 * HIDDEN          # 256, PyTorch gate order: i, f, g, o
DEC_ROWS = 72                # 64 weight rows + 1 bias row, padded to a sublane multiple
MAX_BLOCK_B = 256            # padded-batch rows per grid block (parallel axis)


def lstm_simple_kernel(gx_ref, wh_ref, dec_ref, out_ref):
    """gx_ref:  [T, Bb, 256] f32  per-step input pre-activations (g-gate lanes pre-scaled by 2).
       wh_ref:  [64, 256]   bf16  W_hh^T with g-gate columns pre-scaled by 2.
       dec_ref: [72, 2]     f32   rows 0:64 folded decoder weight, row 64 folded bias.
       out_ref: [Bb, 2]     f32
    """
    T = gx_ref.shape[0]
    wh = wh_ref[...]                                   # resident bf16 [64, 256] (8 vregs)

    def gates(pre):
        # One full-tile sigmoid per step; tanh(x) = 2*sigmoid(2x) - 1 on the pre-scaled g lanes.
        s = jax.nn.sigmoid(pre)                        # [Bb, 256], single EUP pass
        i_g = s[:, 0:HIDDEN]
        f_g = s[:, HIDDEN:2 * HIDDEN]
        c_g = 2.0 * s[:, 2 * HIDDEN:3 * HIDDEN] - 1.0  # == tanh of the unscaled pre-activation
        o_g = s[:, 3 * HIDDEN:4 * HIDDEN]
        return i_g, f_g, c_g, o_g

    # t = 0: h0 = c0 = 0 -> skip the recurrent matmul and the forget-gate term.
    i_g, _, c_g, o_g = gates(gx_ref[0])
    c = i_g * c_g
    h = o_g * jnp.tanh(c)

    # T is small and static -> fully unrolled serial recurrence (bf16 MXU operands, f32 accum).
    for t in range(1, T):
        pre = gx_ref[t] + jnp.dot(h.astype(jnp.bfloat16), wh,
                                  preferred_element_type=jnp.float32)
        i_g, f_g, c_g, o_g = gates(pre)
        c = f_g * c + i_g * c_g
        h = o_g * jnp.tanh(c)

    # Folded decoder (kept f32): out = h @ A + b
    wd = dec_ref[0:HIDDEN, :]                          # [64, 2]
    bd = dec_ref[HIDDEN:HIDDEN + 1, :]                 # [1, 2]
    out_ref[...] = jnp.dot(h, wd, preferred_element_type=jnp.float32) + bd


def _fold_params(params):
    """Host-side folding: hist_emb into the LSTM input projection, whole decoder into one affine,
       2x pre-scale of the candidate-gate columns, bf16 cast of the recurrent weight."""
    f32 = lambda a: jnp.asarray(a, jnp.float32)

    We, be = f32(params["emb_w"]), f32(params["emb_b"])            # [32,6], [32]
    Wih, Whh = f32(params["w_ih"]), f32(params["w_hh"])            # [256,32], [256,64]
    bih, bhh = f32(params["b_ih"]), f32(params["b_hh"])            # [256], [256]

    Wx = (Wih @ We).T                                              # [6, 256]
    bx = be @ Wih.T + bih + bhh                                    # [256]
    Wh = Whh.T                                                     # [64, 256]

    # 2x pre-scale of the candidate-gate (g) columns -> kernel uses one full-tile sigmoid
    # per step and recovers tanh via 2*sigmoid(2x) - 1.
    g_sl = slice(2 * HIDDEN, 3 * HIDDEN)
    Wx = Wx.at[:, g_sl].multiply(2.0)
    bx = bx.at[g_sl].multiply(2.0)
    Wh = Wh.at[:, g_sl].multiply(2.0)

    # Decoder: Linear(64,32) -> BN(32) -> Dropout(id) -> Linear(32,8) -> BN(8) -> Linear(8,2),
    # all affine in eval mode -> fold into a single [64]->[2] affine map.
    A = f32(params["dec_w1"]).T                                    # [64, 32]
    cvec = f32(params["dec_b1"])                                   # [32]
    s1 = f32(params["bn1_gamma"]) * jax.lax.rsqrt(f32(params["bn1_var"]) + BN_EPS)
    A = A * s1
    cvec = (cvec - f32(params["bn1_mean"])) * s1 + f32(params["bn1_beta"])
    A = A @ f32(params["dec_w2"]).T                                # [64, 8]
    cvec = cvec @ f32(params["dec_w2"]).T + f32(params["dec_b2"])
    s2 = f32(params["bn2_gamma"]) * jax.lax.rsqrt(f32(params["bn2_var"]) + BN_EPS)
    A = A * s2
    cvec = (cvec - f32(params["bn2_mean"])) * s2 + f32(params["bn2_beta"])
    A = A @ f32(params["dec_w3"]).T                                # [64, 2]
    cvec = cvec @ f32(params["dec_w3"]).T + f32(params["dec_b3"])  # [2]

    dslab = jnp.zeros((DEC_ROWS, 2), jnp.float32)
    dslab = dslab.at[0:HIDDEN, :].set(A)
    dslab = dslab.at[HIDDEN, :].set(cvec)

    return Wx, bx, Wh.astype(jnp.bfloat16), dslab


def _round_up(x, m):
    return ((x + m - 1) // m) * m


def lstm_simple_forward(params, self_hist, neigb=None):
    """Pallas wrapper. self_hist: [B, T, 6].  neigb is accepted (module signature) but unused."""
    B, T, F = self_hist.shape
    assert F == 6

    Wx, bx, wh_bf16, dslab = _fold_params(params)

    # Hoisted, lane-dense input projection for every time step (one XLA matmul overlapped with the
    # weight-slab DMA): [B*T, 6] @ [6, 256] + bias.
    x = self_hist.astype(jnp.float32)
    gx = x.reshape(B * T, F) @ Wx + bx                     # [B*T, 256]
    gx = gx.reshape(B, T, NGATES).transpose(1, 0, 2)       # time-major [T, B, 256]

    # Pad batch to a sublane multiple (and to the block size if gridded).  Padded rows are all-zero
    # pre-activations -> they stay exactly h = c = 0 through the recurrence (sliced away at the end).
    Bp = _round_up(B, 8)
    if Bp > MAX_BLOCK_B:
        block_b = MAX_BLOCK_B
        Bp = _round_up(Bp, MAX_BLOCK_B)
    else:
        block_b = Bp
    gx = jnp.pad(gx, ((0, 0), (0, Bp - B), (0, 0)))        # [T, Bp, 256]

    out = pl.pallas_call(
        lstm_simple_kernel,
        out_shape=jax.ShapeDtypeStruct((Bp, 2), jnp.float32),
        grid=(Bp // block_b,),
        in_specs=[
            pl.BlockSpec((T, block_b, NGATES), lambda i: (0, i, 0)),
            pl.BlockSpec((HIDDEN, NGATES), lambda i: (0, 0)),
            pl.BlockSpec((DEC_ROWS, 2), lambda i: (0, 0)),
        ],
        out_specs=pl.BlockSpec((block_b, 2), lambda i: (i, 0)),
        compiler_params=pltpu.CompilerParams(dimension_semantics=("parallel",)),
    )(gx, wh_bf16, dslab)
    return out[:B]                                         # [B, 2]


# ---------------- pure-JAX reference (unfolded f32 math, plain XLA) ----------------
def reference_forward(params, self_hist, neigb=None):
    B, T, F = self_hist.shape
    x = self_hist.astype(jnp.float32)
    emb = x @ jnp.asarray(params["emb_w"]).T + jnp.asarray(params["emb_b"])      # [B, T, 32]

    Wih, Whh = jnp.asarray(params["w_ih"]), jnp.asarray(params["w_hh"])
    bih, bhh = jnp.asarray(params["b_ih"]), jnp.asarray(params["b_hh"])
    h = jnp.zeros((B, HIDDEN), jnp.float32)
    c = jnp.zeros((B, HIDDEN), jnp.float32)
    for t in range(T):
        g = emb[:, t, :] @ Wih.T + bih + h @ Whh.T + bhh
        i_g = jax.nn.sigmoid(g[:, 0:HIDDEN])
        f_g = jax.nn.sigmoid(g[:, HIDDEN:2 * HIDDEN])
        c_g = jnp.tanh(g[:, 2 * HIDDEN:3 * HIDDEN])
        o_g = jax.nn.sigmoid(g[:, 3 * HIDDEN:4 * HIDDEN])
        c = f_g * c + i_g * c_g
        h = o_g * jnp.tanh(c)

    # decoder (eval mode)
    y = h @ jnp.asarray(params["dec_w1"]).T + jnp.asarray(params["dec_b1"])
    y = (y - params["bn1_mean"]) / jnp.sqrt(params["bn1_var"] + BN_EPS) * params["bn1_gamma"] + params["bn1_beta"]
    y = y @ jnp.asarray(params["dec_w2"]).T + jnp.asarray(params["dec_b2"])
    y = (y - params["bn2_mean"]) / jnp.sqrt(params["bn2_var"] + BN_EPS) * params["bn2_gamma"] + params["bn2_beta"]
    y = y @ jnp.asarray(params["dec_w3"]).T + jnp.asarray(params["dec_b3"])
    return y                                                       # [B, 2]


# ---------------- deterministic synthetic parameter init ----------------
def init_params(key):
    def linear(k, out_f, in_f):
        kw, kb = jax.random.split(k)
        bound = 1.0 / math.sqrt(in_f)
        w = jax.random.uniform(kw, (out_f, in_f), jnp.float32, -bound, bound)
        b = jax.random.uniform(kb, (out_f,), jnp.float32, -bound, bound)
        return w, b

    ks = list(jax.random.split(key, 16))
    p = {}
    p["emb_w"], p["emb_b"] = linear(ks[0], 32, 6)                  # Linear(6, 32)

    k = 1.0 / math.sqrt(HIDDEN)                                    # LSTM(32, 64) init
    p["w_ih"] = jax.random.uniform(ks[1], (NGATES, 32), jnp.float32, -k, k)
    p["w_hh"] = jax.random.uniform(ks[2], (NGATES, HIDDEN), jnp.float32, -k, k)
    p["b_ih"] = jax.random.uniform(ks[3], (NGATES,), jnp.float32, -k, k)
    p["b_hh"] = jax.random.uniform(ks[4], (NGATES,), jnp.float32, -k, k)

    p["dec_w1"], p["dec_b1"] = linear(ks[5], 32, 64)               # Linear(64, 32)
    p["bn1_gamma"] = 1.0 + 0.1 * jax.random.normal(ks[6], (32,), jnp.float32)
    p["bn1_beta"] = 0.1 * jax.random.normal(ks[7], (32,), jnp.float32)
    p["bn1_mean"] = 0.1 * jax.random.normal(ks[8], (32,), jnp.float32)
    p["bn1_var"] = jax.random.uniform(ks[9], (32,), jnp.float32, 0.5, 1.5)
    p["dec_w2"], p["dec_b2"] = linear(ks[10], 8, 32)               # Linear(32, 8)
    p["bn2_gamma"] = 1.0 + 0.1 * jax.random.normal(ks[11], (8,), jnp.float32)
    p["bn2_beta"] = 0.1 * jax.random.normal(ks[12], (8,), jnp.float32)
    p["bn2_mean"] = 0.1 * jax.random.normal(ks[13], (8,), jnp.float32)
    p["bn2_var"] = jax.random.uniform(ks[14], (8,), jnp.float32, 0.5, 1.5)
    p["dec_w3"], p["dec_b3"] = linear(ks[15], 2, 8)                # Linear(8, 2)
    return p


if __name__ == "__main__":
    key = jax.random.PRNGKey(0)
    kp, kx, kn = jax.random.split(key, 3)
    params = init_params(kp)

    B, T = 2, 8
    self_hist = jax.random.normal(kx, (B, T, 6), jnp.float32)      # [B, T=8, F=6]
    neigb = jax.random.normal(kn, (B, 1, T, 6), jnp.float32)       # unused by the module's forward

    out = lstm_simple_forward(params, self_hist, neigb)
    out = jax.block_until_ready(out)
    assert out.shape == (B, 2), out.shape

    ref = jax.block_until_ready(reference_forward(params, self_hist, neigb))
    # Tolerance loosened vs. the pure-f32 version: the 8-step recurrence uses bf16 MXU operands
    # (f32 accumulation), which accumulates a small rounding difference against the f32 reference.
    np.testing.assert_allclose(np.asarray(out), np.asarray(ref), rtol=2e-2, atol=2e-2)

    # TODO(synk): Dropout (train mode) and BatchNorm batch-statistics are not implemented; eval-mode
    #             semantics (identity dropout, running stats folded on the host) are used.
    print("KERNEL_OK")
</pallas_src>

<mosaic_0001>
module attributes {stable_mosaic.version = 11 : i64} {
  func.func @lstm_simple_kernel(%arg0: i32, %arg1: memref<8x8x256xf32, #tpu.memory_space<vmem>>, %arg2: memref<64x256xbf16, #tpu.memory_space<vmem>>, %arg3: memref<72x2xf32, #tpu.memory_space<vmem>>, %arg4: memref<8x2xf32, #tpu.memory_space<vmem>>) attributes {dimension_semantics = [#tpu.dimension_semantics<parallel>], iteration_bounds = array<i64: 1>, scalar_prefetch = 0 : i64, scratch_operands = 0 : i64, tpu.core_type = #tpu.core_type<tc>, window_params = [{transform_indices = @transform_0, window_bounds = array<i64: 8, 8, 256>}, {pipeline_mode = #tpu.pipeline_mode<synchronous>, transform_indices = @transform_1, window_bounds = array<i64: 64, 256>}, {pipeline_mode = #tpu.pipeline_mode<synchronous>, transform_indices = @transform_2, window_bounds = array<i64: 72, 2>}, {transform_indices = @transform_3, window_bounds = array<i64: 8, 2>}]} {
    %c0 = arith.constant 0 : index
    %c0_0 = arith.constant 0 : index
    %0 = vector.load %arg2[%c0, %c0_0] : memref<64x256xbf16, #tpu.memory_space<vmem>>, vector<64x256xbf16>
    %c0_1 = arith.constant 0 : index
    %c0_2 = arith.constant 0 : index
    %c0_3 = arith.constant 0 : index
    %1 = vector.load %arg1[%c0_1, %c0_2, %c0_3] : memref<8x8x256xf32, #tpu.memory_space<vmem>>, vector<1x8x256xf32>
    %2 = vector.shape_cast %1 : vector<1x8x256xf32> to vector<8x256xf32>
    %3 = arith.negf %2 : vector<8x256xf32>
    %4 = math.exp %3 : vector<8x256xf32>
    %cst = arith.constant 1.000000e+00 : f32
    %5 = vector.broadcast %cst : f32 to vector<8x256xf32>
    %6 = arith.addf %5, %4 : vector<8x256xf32>
    %7 = arith.divf %5, %6 : vector<8x256xf32>
    %8 = vector.extract_strided_slice %7 {offsets = [0, 0], sizes = [8, 64], strides = [1, 1]} : vector<8x256xf32> to vector<8x64xf32>
    %9 = vector.extract_strided_slice %7 {offsets = [0, 128], sizes = [8, 64], strides = [1, 1]} : vector<8x256xf32> to vector<8x64xf32>
    %cst_4 = arith.constant 2.000000e+00 : f32
    %10 = vector.broadcast %cst_4 : f32 to vector<8x64xf32>
    %11 = arith.mulf %10, %9 : vector<8x64xf32>
    %cst_5 = arith.constant 1.000000e+00 : f32
    %12 = vector.broadcast %cst_5 : f32 to vector<8x64xf32>
    %13 = arith.subf %11, %12 : vector<8x64xf32>
    %14 = vector.extract_strided_slice %7 {offsets = [0, 192], sizes = [8, 64], strides = [1, 1]} : vector<8x256xf32> to vector<8x64xf32>
    %15 = arith.mulf %8, %13 : vector<8x64xf32>
    %16 = math.tanh %15 : vector<8x64xf32>
    %17 = arith.mulf %14, %16 : vector<8x64xf32>
    %c1 = arith.constant 1 : index
    %c0_6 = arith.constant 0 : index
    %c0_7 = arith.constant 0 : index
    %18 = vector.load %arg1[%c1, %c0_6, %c0_7] : memref<8x8x256xf32, #tpu.memory_space<vmem>>, vector<1x8x256xf32>
    %19 = vector.shape_cast %18 : vector<1x8x256xf32> to vector<8x256xf32>
    %20 = arith.truncf %17 : vector<8x64xf32> to vector<8x64xbf16>
    %cst_8 = arith.constant dense<0.000000e+00> : vector<8x256xf32>
    %21 = tpu.matmul %20, %0, %cst_8 {dimension_numbers = #tpu.dot_dimension_numbers<[1], [0], [0], [1], [0, 0, 1, 1], [], []>} : vector<8x64xbf16>, vector<64x256xbf16>, vector<8x256xf32> -> vector<8x256xf32>
    %22 = arith.addf %19, %21 : vector<8x256xf32>
    %23 = arith.negf %22 : vector<8x256xf32>
    %24 = math.exp %23 : vector<8x256xf32>
    %cst_9 = arith.constant 1.000000e+00 : f32
    %25 = vector.broadcast %cst_9 : f32 to vector<8x256xf32>
    %26 = arith.addf %25, %24 : vector<8x256xf32>
    %27 = arith.divf %25, %26 : vector<8x256xf32>
    %28 = vector.extract_strided_slice %27 {offsets = [0, 0], sizes = [8, 64], strides = [1, 1]} : vector<8x256xf32> to vector<8x64xf32>
    %29 = vector.extract_strided_slice %27 {offsets = [0, 64], sizes = [8, 64], strides = [1, 1]} : vector<8x256xf32> to vector<8x64xf32>
    %30 = vector.extract_strided_slice %27 {offsets = [0, 128], sizes = [8, 64], strides = [1, 1]} : vector<8x256xf32> to vector<8x64xf32>
    %cst_10 = arith.constant 2.000000e+00 : f32
    %31 = vector.broadcast %cst_10 : f32 to vector<8x64xf32>
    %32 = arith.mulf %31, %30 : vector<8x64xf32>
    %cst_11 = arith.constant 1.000000e+00 : f32
    %33 = vector.broadcast %cst_11 : f32 to vector<8x64xf32>
    %34 = arith.subf %32, %33 : vector<8x64xf32>
    %35 = vector.extract_strided_slice %27 {offsets = [0, 192], sizes = [8, 64], strides = [1, 1]} : vector<8x256xf32> to vector<8x64xf32>
    %36 = arith.mulf %29, %15 : vector<8x64xf32>
    %37 = arith.mulf %28, %34 : vector<8x64xf32>
    %38 = arith.addf %36, %37 : vector<8x64xf32>
    %39 = math.tanh %38 : vector<8x64xf32>
    %40 = arith.mulf %35, %39 : vector<8x64xf32>
    %c2 = arith.constant 2 : index
    %c0_12 = arith.constant 0 : index
    %c0_13 = arith.constant 0 : index
    %41 = vector.load %arg1[%c2, %c0_12, %c0_13] : memref<8x8x256xf32, #tpu.memory_space<vmem>>, vector<1x8x256xf32>
    %42 = vector.shape_cast %41 : vector<1x8x256xf32> to vector<8x256xf32>
    %43 = arith.truncf %40 : vector<8x64xf32> to vector<8x64xbf16>
    %cst_14 = arith.constant dense<0.000000e+00> : vector<8x256xf32>
    %44 = tpu.matmul %43, %0, %cst_14 {dimension_numbers = #tpu.dot_dimension_numbers<[1], [0], [0], [1], [0, 0, 1, 1], [], []>} : vector<8x64xbf16>, vector<64x256xbf16>, vector<8x256xf32> -> vector<8x256xf32>
    %45 = arith.addf %42, %44 : vector<8x256xf32>
    %46 = arith.negf %45 : vector<8x256xf32>
    %47 = math.exp %46 : vector<8x256xf32>
    %cst_15 = arith.constant 1.000000e+00 : f32
    %48 = vector.broadcast %cst_15 : f32 to vector<8x256xf32>
    %49 = arith.addf %48, %47 : vector<8x256xf32>
    %50 = arith.divf %48, %49 : vector<8x256xf32>
    %51 = vector.extract_strided_slice %50 {offsets = [0, 0], sizes = [8, 64], strides = [1, 1]} : vector<8x256xf32> to vector<8x64xf32>
    %52 = vector.extract_strided_slice %50 {offsets = [0, 64], sizes = [8, 64], strides = [1, 1]} : vector<8x256xf32> to vector<8x64xf32>
    %53 = vector.extract_strided_slice %50 {offsets = [0, 128], sizes = [8, 64], strides = [1, 1]} : vector<8x256xf32> to vector<8x64xf32>
    %cst_16 = arith.constant 2.000000e+00 : f32
    %54 = vector.broadcast %cst_16 : f32 to vector<8x64xf32>
    %55 = arith.mulf %54, %53 : vector<8x64xf32>
    %cst_17 = arith.constant 1.000000e+00 : f32
    %56 = vector.broadcast %cst_17 : f32 to vector<8x64xf32>
    %57 = arith.subf %55, %56 : vector<8x64xf32>
    %58 = vector.extract_strided_slice %50 {offsets = [0, 192], sizes = [8, 64], strides = [1, 1]} : vector<8x256xf32> to vector<8x64xf32>
    %59 = arith.mulf %52, %38 : vector<8x64xf32>
    %60 = arith.mulf %51, %57 : vector<8x64xf32>
    %61 = arith.addf %59, %60 : vector<8x64xf32>
    %62 = math.tanh %61 : vector<8x64xf32>
    %63 = arith.mulf %58, %62 : vector<8x64xf32>
    %c3 = arith.constant 3 : index
    %c0_18 = arith.constant 0 : index
    %c0_19 = arith.constant 0 : index
    %64 = vector.load %arg1[%c3, %c0_18, %c0_19] : memref<8x8x256xf32, #tpu.memory_space<vmem>>, vector<1x8x256xf32>
    %65 = vector.shape_cast %64 : vector<1x8x256xf32> to vector<8x256xf32>
    %66 = arith.truncf %63 : vector<8x64xf32> to vector<8x64xbf16>
    %cst_20 = arith.constant dense<0.000000e+00> : vector<8x256xf32>
    %67 = tpu.matmul %66, %0, %cst_20 {dimension_numbers = #tpu.dot_dimension_numbers<[1], [0], [0], [1], [0, 0, 1, 1], [], []>} : vector<8x64xbf16>, vector<64x256xbf16>, vector<8x256xf32> -> vector<8x256xf32>
    %68 = arith.addf %65, %67 : vector<8x256xf32>
    %69 = arith.negf %68 : vector<8x256xf32>
    %70 = math.exp %69 : vector<8x256xf32>
    %cst_21 = arith.constant 1.000000e+00 : f32
    %71 = vector.broadcast %cst_21 : f32 to vector<8x256xf32>
    %72 = arith.addf %71, %70 : vector<8x256xf32>
    %73 = arith.divf %71, %72 : vector<8x256xf32>
    %74 = vector.extract_strided_slice %73 {offsets = [0, 0], sizes = [8, 64], strides = [1, 1]} : vector<8x256xf32> to vector<8x64xf32>
    %75 = vector.extract_strided_slice %73 {offsets = [0, 64], sizes = [8, 64], strides = [1, 1]} : vector<8x256xf32> to vector<8x64xf32>
    %76 = vector.extract_strided_slice %73 {offsets = [0, 128], sizes = [8, 64], strides = [1, 1]} : vector<8x256xf32> to vector<8x64xf32>
    %cst_22 = arith.constant 2.000000e+00 : f32
    %77 = vector.broadcast %cst_22 : f32 to vector<8x64xf32>
    %78 = arith.mulf %77, %76 : vector<8x64xf32>
    %cst_23 = arith.constant 1.000000e+00 : f32
    %79 = vector.broadcast %cst_23 : f32 to vector<8x64xf32>
    %80 = arith.subf %78, %79 : vector<8x64xf32>
    %81 = vector.extract_strided_slice %73 {offsets = [0, 192], sizes = [8, 64], strides = [1, 1]} : vector<8x256xf32> to vector<8x64xf32>
    %82 = arith.mulf %75, %61 : vector<8x64xf32>
    %83 = arith.mulf %74, %80 : vector<8x64xf32>
    %84 = arith.addf %82, %83 : vector<8x64xf32>
    %85 = math.tanh %84 : vector<8x64xf32>
    %86 = arith.mulf %81, %85 : vector<8x64xf32>
    %c4 = arith.constant 4 : index
    %c0_24 = arith.constant 0 : index
    %c0_25 = arith.constant 0 : index
    %87 = vector.load %arg1[%c4, %c0_24, %c0_25] : memref<8x8x256xf32, #tpu.memory_space<vmem>>, vector<1x8x256xf32>
    %88 = vector.shape_cast %87 : vector<1x8x256xf32> to vector<8x256xf32>
    %89 = arith.truncf %86 : vector<8x64xf32> to vector<8x64xbf16>
    %cst_26 = arith.constant dense<0.000000e+00> : vector<8x256xf32>
    %90 = tpu.matmul %89, %0, %cst_26 {dimension_numbers = #tpu.dot_dimension_numbers<[1], [0], [0], [1], [0, 0, 1, 1], [], []>} : vector<8x64xbf16>, vector<64x256xbf16>, vector<8x256xf32> -> vector<8x256xf32>
    %91 = arith.addf %88, %90 : vector<8x256xf32>
    %92 = arith.negf %91 : vector<8x256xf32>
    %93 = math.exp %92 : vector<8x256xf32>
    %cst_27 = arith.constant 1.000000e+00 : f32
    %94 = vector.broadcast %cst_27 : f32 to vector<8x256xf32>
    %95 = arith.addf %94, %93 : vector<8x256xf32>
    %96 = arith.divf %94, %95 : vector<8x256xf32>
    %97 = vector.extract_strided_slice %96 {offsets = [0, 0], sizes = [8, 64], strides = [1, 1]} : vector<8x256xf32> to vector<8x64xf32>
    %98 = vector.extract_strided_slice %96 {offsets = [0, 64], sizes = [8, 64], strides = [1, 1]} : vector<8x256xf32> to vector<8x64xf32>
    %99 = vector.extract_strided_slice %96 {offsets = [0, 128], sizes = [8, 64], strides = [1, 1]} : vector<8x256xf32> to vector<8x64xf32>
    %cst_28 = arith.constant 2.000000e+00 : f32
    %100 = vector.broadcast %cst_28 : f32 to vector<8x64xf32>
    %101 = arith.mulf %100, %99 : vector<8x64xf32>
    %cst_29 = arith.constant 1.000000e+00 : f32
    %102 = vector.broadcast %cst_29 : f32 to vector<8x64xf32>
    %103 = arith.subf %101, %102 : vector<8x64xf32>
    %104 = vector.extract_strided_slice %96 {offsets = [0, 192], sizes = [8, 64], strides = [1, 1]} : vector<8x256xf32> to vector<8x64xf32>
    %105 = arith.mulf %98, %84 : vector<8x64xf32>
    %106 = arith.mulf %97, %103 : vector<8x64xf32>
    %107 = arith.addf %105, %106 : vector<8x64xf32>
    %108 = math.tanh %107 : vector<8x64xf32>
    %109 = arith.mulf %104, %108 : vector<8x64xf32>
    %c5 = arith.constant 5 : index
    %c0_30 = arith.constant 0 : index
    %c0_31 = arith.constant 0 : index
    %110 = vector.load %arg1[%c5, %c0_30, %c0_31] : memref<8x8x256xf32, #tpu.memory_space<vmem>>, vector<1x8x256xf32>
    %111 = vector.shape_cast %110 : vector<1x8x256xf32> to vector<8x256xf32>
    %112 = arith.truncf %109 : vector<8x64xf32> to vector<8x64xbf16>
    %cst_32 = arith.constant dense<0.000000e+00> : vector<8x256xf32>
    %113 = tpu.matmul %112, %0, %cst_32 {dimension_numbers = #tpu.dot_dimension_numbers<[1], [0], [0], [1], [0, 0, 1, 1], [], []>} : vector<8x64xbf16>, vector<64x256xbf16>, vector<8x256xf32> -> vector<8x256xf32>
    %114 = arith.addf %111, %113 : vector<8x256xf32>
    %115 = arith.negf %114 : vector<8x256xf32>
    %116 = math.exp %115 : vector<8x256xf32>
    %cst_33 = arith.constant 1.000000e+00 : f32
    %117 = vector.broadcast %cst_33 : f32 to vector<8x256xf32>
    %118 = arith.addf %117, %116 : vector<8x256xf32>
    %119 = arith.divf %117, %118 : vector<8x256xf32>
    %120 = vector.extract_strided_slice %119 {offsets = [0, 0], sizes = [8, 64], strides = [1, 1]} : vector<8x256xf32> to vector<8x64xf32>
    %121 = vector.extract_strided_slice %119 {offsets = [0, 64], sizes = [8, 64], strides = [1, 1]} : vector<8x256xf32> to vector<8x64xf32>
    %122 = vector.extract_strided_slice %119 {offsets = [0, 128], sizes = [8, 64], strides = [1, 1]} : vector<8x256xf32> to vector<8x64xf32>
    %cst_34 = arith.constant 2.000000e+00 : f32
    %123 = vector.broadcast %cst_34 : f32 to vector<8x64xf32>
    %124 = arith.mulf %123, %122 : vector<8x64xf32>
    %cst_35 = arith.constant 1.000000e+00 : f32
    %125 = vector.broadcast %cst_35 : f32 to vector<8x64xf32>
    %126 = arith.subf %124, %125 : vector<8x64xf32>
    %127 = vector.extract_strided_slice %119 {offsets = [0, 192], sizes = [8, 64], strides = [1, 1]} : vector<8x256xf32> to vector<8x64xf32>
    %128 = arith.mulf %121, %107 : vector<8x64xf32>
    %129 = arith.mulf %120, %126 : vector<8x64xf32>
    %130 = arith.addf %128, %129 : vector<8x64xf32>
    %131 = math.tanh %130 : vector<8x64xf32>
    %132 = arith.mulf %127, %131 : vector<8x64xf32>
    %c6 = arith.constant 6 : index
    %c0_36 = arith.constant 0 : index
    %c0_37 = arith.constant 0 : index
    %133 = vector.load %arg1[%c6, %c0_36, %c0_37] : memref<8x8x256xf32, #tpu.memory_space<vmem>>, vector<1x8x256xf32>
    %134 = vector.shape_cast %133 : vector<1x8x256xf32> to vector<8x256xf32>
    %135 = arith.truncf %132 : vector<8x64xf32> to vector<8x64xbf16>
    %cst_38 = arith.constant dense<0.000000e+00> : vector<8x256xf32>
    %136 = tpu.matmul %135, %0, %cst_38 {dimension_numbers = #tpu.dot_dimension_numbers<[1], [0], [0], [1], [0, 0, 1, 1], [], []>} : vector<8x64xbf16>, vector<64x256xbf16>, vector<8x256xf32> -> vector<8x256xf32>
    %137 = arith.addf %134, %136 : vector<8x256xf32>
    %138 = arith.negf %137 : vector<8x256xf32>
    %139 = math.exp %138 : vector<8x256xf32>
    %cst_39 = arith.constant 1.000000e+00 : f32
    %140 = vector.broadcast %cst_39 : f32 to vector<8x256xf32>
    %141 = arith.addf %140, %139 : vector<8x256xf32>
    %142 = arith.divf %140, %141 : vector<8x256xf32>
    %143 = vector.extract_strided_slice %142 {offsets = [0, 0], sizes = [8, 64], strides = [1, 1]} : vector<8x256xf32> to vector<8x64xf32>
    %144 = vector.extract_strided_slice %142 {offsets = [0, 64], sizes = [8, 64], strides = [1, 1]} : vector<8x256xf32> to vector<8x64xf32>
    %145 = vector.extract_strided_slice %142 {offsets = [0, 128], sizes = [8, 64], strides = [1, 1]} : vector<8x256xf32> to vector<8x64xf32>
    %cst_40 = arith.constant 2.000000e+00 : f32
    %146 = vector.broadcast %cst_40 : f32 to vector<8x64xf32>
    %147 = arith.mulf %146, %145 : vector<8x64xf32>
    %cst_41 = arith.constant 1.000000e+00 : f32
    %148 = vector.broadcast %cst_41 : f32 to vector<8x64xf32>
    %149 = arith.subf %147, %148 : vector<8x64xf32>
    %150 = vector.extract_strided_slice %142 {offsets = [0, 192], sizes = [8, 64], strides = [1, 1]} : vector<8x256xf32> to vector<8x64xf32>
    %151 = arith.mulf %144, %130 : vector<8x64xf32>
    %152 = arith.mulf %143, %149 : vector<8x64xf32>
    %153 = arith.addf %151, %152 : vector<8x64xf32>
    %154 = math.tanh %153 : vector<8x64xf32>
    %155 = arith.mulf %150, %154 : vector<8x64xf32>
    %c7 = arith.constant 7 : index
    %c0_42 = arith.constant 0 : index
    %c0_43 = arith.constant 0 : index
    %156 = vector.load %arg1[%c7, %c0_42, %c0_43] : memref<8x8x256xf32, #tpu.memory_space<vmem>>, vector<1x8x256xf32>
    %157 = vector.shape_cast %156 : vector<1x8x256xf32> to vector<8x256xf32>
    %158 = arith.truncf %155 : vector<8x64xf32> to vector<8x64xbf16>
    %cst_44 = arith.constant dense<0.000000e+00> : vector<8x256xf32>
    %159 = tpu.matmul %158, %0, %cst_44 {dimension_numbers = #tpu.dot_dimension_numbers<[1], [0], [0], [1], [0, 0, 1, 1], [], []>} : vector<8x64xbf16>, vector<64x256xbf16>, vector<8x256xf32> -> vector<8x256xf32>
    %160 = arith.addf %157, %159 : vector<8x256xf32>
    %161 = arith.negf %160 : vector<8x256xf32>
    %162 = math.exp %161 : vector<8x256xf32>
    %cst_45 = arith.constant 1.000000e+00 : f32
    %163 = vector.broadcast %cst_45 : f32 to vector<8x256xf32>
    %164 = arith.addf %163, %162 : vector<8x256xf32>
    %165 = arith.divf %163, %164 : vector<8x256xf32>
    %166 = vector.extract_strided_slice %165 {offsets = [0, 0], sizes = [8, 64], strides = [1, 1]} : vector<8x256xf32> to vector<8x64xf32>
    %167 = vector.extract_strided_slice %165 {offsets = [0, 64], sizes = [8, 64], strides = [1, 1]} : vector<8x256xf32> to vector<8x64xf32>
    %168 = vector.extract_strided_slice %165 {offsets = [0, 128], sizes = [8, 64], strides = [1, 1]} : vector<8x256xf32> to vector<8x64xf32>
    %cst_46 = arith.constant 2.000000e+00 : f32
    %169 = vector.broadcast %cst_46 : f32 to vector<8x64xf32>
    %170 = arith.mulf %169, %168 : vector<8x64xf32>
    %cst_47 = arith.constant 1.000000e+00 : f32
    %171 = vector.broadcast %cst_47 : f32 to vector<8x64xf32>
    %172 = arith.subf %170, %171 : vector<8x64xf32>
    %173 = vector.extract_strided_slice %165 {offsets = [0, 192], sizes = [8, 64], strides = [1, 1]} : vector<8x256xf32> to vector<8x64xf32>
    %174 = arith.mulf %167, %153 : vector<8x64xf32>
    %175 = arith.mulf %166, %172 : vector<8x64xf32>
    %176 = arith.addf %174, %175 : vector<8x64xf32>
    %177 = math.tanh %176 : vector<8x64xf32>
    %178 = arith.mulf %173, %177 : vector<8x64xf32>
    %c0_48 = arith.constant 0 : index
    %c0_49 = arith.constant 0 : index
    %179 = vector.load %arg3[%c0_48, %c0_49] : memref<72x2xf32, #tpu.memory_space<vmem>>, vector<64x2xf32>
    %c64 = arith.constant 64 : index
    %c0_50 = arith.constant 0 : index
    %180 = vector.load %arg3[%c64, %c0_50] : memref<72x2xf32, #tpu.memory_space<vmem>>, vector<1x2xf32>
    %cst_51 = arith.constant dense<0.000000e+00> : vector<8x2xf32>
    %181 = tpu.matmul %178, %179, %cst_51 {dimension_numbers = #tpu.dot_dimension_numbers<[1], [0], [0], [1], [0, 0, 1, 1], [], []>} : vector<8x64xf32>, vector<64x2xf32>, vector<8x2xf32> -> vector<8x2xf32>
    %182 = vector.broadcast %180 : vector<1x2xf32> to vector<8x2xf32>
    %183 = arith.addf %181, %182 : vector<8x2xf32>
    %c0_52 = arith.constant 0 : index
    %c0_53 = arith.constant 0 : index
    %184 = vector.load %arg4[%c0_52, %c0_53] : memref<8x2xf32, #tpu.memory_space<vmem>>, vector<8x2xf32>
    tpu.vector_store %arg4[%c0_52, %c0_53], %183 {strides = array<i32>} : memref<8x2xf32, #tpu.memory_space<vmem>>, vector<8x2xf32>,
    return
  }
  func.func @transform_0(%arg0: i32) -> (i32, i32, i32) {
    %c0_i32 = arith.constant 0 : i32
    %c0_i32_0 = arith.constant 0 : i32
    %c0_i32_1 = arith.constant 0 : i32
    return %c0_i32, %arg0, %c0_i32_0 : i32, i32, i32
  }
  func.func @transform_1(%arg0: i32) -> (i32, i32) {
    %c0_i32 = arith.constant 0 : i32
    %c0_i32_0 = arith.constant 0 : i32
    %c0_i32_1 = arith.constant 0 : i32
    return %c0_i32, %c0_i32_0 : i32, i32
  }
  func.func @transform_2(%arg0: i32) -> (i32, i32) {
    %c0_i32 = arith.constant 0 : i32
    %c0_i32_0 = arith.constant 0 : i32
    %c0_i32_1 = arith.constant 0 : i32
    return %c0_i32, %c0_i32_0 : i32, i32
  }
  func.func @transform_3(%arg0: i32) -> (i32, i32) {
    %c0_i32 = arith.constant 0 : i32
    %c0_i32_0 = arith.constant 0 : i32
    return %arg0, %c0_i32 : i32, i32
  }
}

</mosaic_0001>

<bundles_post_ra>
// kernel: tpu_custom_call.1
= control target key start
LH: loop header
LB: loop body
LE: loop exit
PB: predicated region body
PF: predicated region fallthrough
CT: control target
= control target key end

     0   :  { %8 = vsyncpa [#allocation3], 0  ;;  %s937_s12 = smov [#allocation2]   ;;  %s1135_s0 = inlined_call_operand.hbm [shape: f32[8,8,256], index: 0, kind: input, shape index: {}]   ;;  %s1136_s1 = inlined_call_operand.vmem [shape: bf16[64,256], index: 1, kind: input, shape index: {}]   ;;  %s1137_s2 = inlined_call_operand.vmem [shape: f32[72,2], index: 2, kind: input, shape index: {}]   ;;  %s1138_s3 = inlined_call_operand.vmem [shape: f32[8,2], index: 3, kind: output, shape index: {}]  }
   0x1   :  { %s14_s13 = sshll.u32 %s937_s12, 4  ;;  %s913_s16 = scalar_lea.hbm %s1135_s0, 2048  ;;  %s15_s13 = int_to_ptr.vmem [resolvable:$true] %s14_s13 }
   0x2   :  { %p914_p0 = scmp.ne.s32.totalorder %s1135_s0, %s913_s16  ;;  %p917_p1 = scmp.lt.u32.totalorder %s913_s16, %s1135_s0 }
   0x4   :  { %p919_p2 = pnand %p917_p1, %p914_p0 }
   0x6   :  { %922 = shalt.err (!%p919_p2)
}
   0x7   :  { %s923_s21 = scalar_lea.vmem %s15_s13, 2048  ;;  %p928_p4 = scmp.lt.s32.totalorder %s15_s13, %s15_s13 }
   0x8   :  { %p924_p3 = scmp.ne.s32.totalorder %s15_s13, %s923_s21  ;;  %p929_p5 = scmp.lt.s32.totalorder %s923_s21, %s923_s21 }
   0xa   :  { %p930_p6 = por %p929_p5, %p928_p4 }
   0xc   :  { %p931_p7 = pnand %p930_p6, %p924_p3 }
   0xe   :  { %934 = shalt.err (!%p931_p7)
}
   0xf   :  { %s938_s22 = smov 256   ;;  %s939_s23 = smov 16  }
  0x10   :  { %20 = dma.hbm_to_vmem [thread:$0]  %s1135_s0, 2048, %s15_s13, [#allocation3], %s938_s22, %s938_s22, %s939_s23  }
  0x11   :  { %935 = dma.done.wait [#allocation3], 2048  }
  0x12   :  { %936 = vsyncadd [#allocation3], 4294965248  ;;  %v37_v0 = vld [vmem:[#allocation2] sm:$0xff]  ;;  %v38_v1 = vld [vmem:[#allocation2 + $0x8] sm:$0xff]  ;;  %s940_s0 = smov 64   ;;  %v941_v17 = vmov 0  }
  0x13   :  { %v732_v2 = vmul.f32 -1.442695, %v37_v0  ;;  %v733_v3 = vmul.f32 -1.442695, %v38_v1  ;;  %v981_v13 = vld [vmem:[%s1136_s1 + $0x4] ss:$8 sps:$4 sm:$0xff]   ;;  %143 = vmatprep.mubr.bf16.mxu0 %v941_v17  ;;  %223 = vmatprep.mubr.bf16.mxu1 %v941_v17 }
  0x14   :  { %v986_v14 = vld [vmem:[%s1136_s1] ss:$8 sps:$4 sm:$0xff]   ;;  %v991_v15 = vld [vmem:[%s1136_s1 + $0x14] ss:$8 sps:$4 sm:$0xff]   ;;  %111 = vmatprep.subr.bf16.mxu0 %v981_v13  ;;  %191 = vmatprep.subr.bf16.mxu1 %v981_v13  ;;  %v999_v16 = vld [vmem:[%s1136_s1 + $0x10] ss:$8 sps:$4 sm:$0xff]  }
  0x15   :  { %833 = vpow2.f32 %v732_v2  ;;  %112 = vmatpush1.bf16.msra.mxu0 %v986_v14  ;;  %v1006_v18 = vld [vmem:[%s1136_s1 + $0x24] ss:$8 sps:$4 sm:$0xff]   ;;  %192 = vmatpush1.bf16.msra.mxu1 %v986_v14  ;;  %v1015_v19 = vld [vmem:[%s1136_s1 + $0x20] ss:$8 sps:$4 sm:$0xff]   ;;  %v1021_v21 = vld [vmem:[%s1136_s1 + $0x34] ss:$8 sps:$4 sm:$0xff]  }
  0x16   :  { %835 = vpow2.f32 %v733_v3  ;;  %113 = vmatprep.subr.bf16.mxu0 %v991_v15  ;;  %193 = vmatprep.subr.bf16.mxu1 %v991_v15  ;;  %v1030_v22 = vld [vmem:[%s1136_s1 + $0x30] ss:$8 sps:$4 sm:$0xff]   ;;  %vm107_vm0 = vcmask 523264   ;;  %v182_v54 = vld [vmem:[#allocation2 + $0x20] sm:$0xff]  ;;  %v183_v55 = vld [vmem:[#allocation2 + $0x28] sm:$0xff]  ;;  %vm943_vm1 = vmmov 0  }
  0x17   :  { %v61_v27 = vld [vmem:[#allocation2 + $0x10] sm:$0xff]  ;;  %v62_v28 = vld [vmem:[#allocation2 + $0x18] sm:$0xff]  ;;  %vm725_vm2 = vcmask 15360  }
  0x19   :  { %114 = vmatpush1.bf16.msra.mxu0 %v999_v16  ;;  %194 = vmatpush1.bf16.msra.mxu1 %v999_v16 }
  0x1a   :  { %115 = vmatprep.subr.bf16.mxu0 %v1006_v18  ;;  %195 = vmatprep.subr.bf16.mxu1 %v1006_v18 }
  0x1d   :  { %116 = vmatpush1.bf16.msra.mxu0 %v1015_v19  ;;  %196 = vmatpush1.bf16.msra.mxu1 %v1015_v19 }
  0x1e   :  { %117 = vmatprep.subr.bf16.mxu0 %v1021_v21  ;;  %197 = vmatprep.subr.bf16.mxu1 %v1021_v21 }
  0x1f   :  { %v834_v4 = vpop.eup %833 }
  0x20   :  { %v836_v5 = vpop.eup %835  ;;  %v45_v6 = vadd.f32 1.0, %v834_v4 }
  0x21   :  { %v46_v7 = vadd.f32 1.0, %v836_v5  ;;  %118 = vmatpush1.bf16.msra.mxu0 %v1030_v22  ;;  %198 = vmatpush1.bf16.msra.mxu1 %v1030_v22 }
  0x22   :  { %267 = vmatprep.subr.bf16.mxu0 %v981_v13  ;;  %343 = vmatprep.subr.bf16.mxu1 %v981_v13 }
  0x23   :  { %837 = vrcp.f32 %v46_v7 }
  0x24   :  { %839 = vrcp.f32 %v45_v6 }
  0x2d   :  { %v838_v8 = vpop.eup %837 }
  0x2e   :  { %v51_v9 = vmul.f32 2.0, %v838_v8  ;;  %v840_v10 = vpop.eup %839 }
  0x30   :  { %v734_v11 = vadd.f32 -1.0, %v51_v9 }
  0x32   :  { %v53_v12 = vmul.f32 %v840_v10, %v734_v11 }
  0x34   :  { %841 = vtanh.f32 %v53_v12  ;;  %169 = vrot.lane.b32.xlu1 %v53_v12, %s940_s0 }
  0x3e   :  { %v842_v20 = vpop.eup %841 }
  0x3f   :  { %56 = vrot.lane.b32.xlu0 %v842_v20, %s940_s0 }
  0xa6   :  { %v170_v46 = vpop.permute.xlu1 %169 }
  0xb1   :  { %v57_v23 = vpop.permute.xlu0 %56 }
  0xb2   :  { %v59_v24 = vmul.f32 %v838_v8, %v57_v23 }
  0xb4   :  { %v63_v25 = vpack.c.bf16 %v59_v24, %v59_v24 }
  0xb6   :  { %65 = vrot.lane.b32.xlu0 %v63_v25, %s940_s0  ;;  %v258_v25 = vld [vmem:[#allocation2 + $0x30] sm:$0xff] }
 0x128   :  { %v66_v26 = vpop.permute.xlu0 %65 }
 0x129   :  { %743 = vmatmul.mubr.msk.bf16.vlgmr.msra.gmra.mrb[0].mxu0 %vm107_vm0, %v66_v26  ;;  %v259_v26 = vld [vmem:[#allocation2 + $0x38] sm:$0xff] }
 0x12a   :  { %268 = vmatpush1.bf16.msra.mxu0 %v986_v14  ;;  %299 = vmatprep.mubr.bf16.mxu0 %v941_v17 }
 0x12b   :  { %269 = vmatprep.subr.bf16.mxu0 %v991_v15 }
 0x12e   :  { %270 = vmatpush1.bf16.msra.mxu0 %v999_v16 }
 0x12f   :  { %271 = vmatprep.subr.bf16.mxu0 %v1006_v18 }
 0x132   :  { %272 = vmatpush1.bf16.msra.mxu0 %v1015_v19 }
 0x133   :  { %273 = vmatprep.subr.bf16.mxu0 %v1021_v21 }
 0x136   :  { %274 = vmatpush1.bf16.msra.mxu0 %v1030_v22 }
 0x137   :  { %419 = vmatprep.subr.bf16.mxu0 %v981_v13 }
 0x1fc   :  { %v145_v29 = vpop.f32.mrb[0].mxu0 }
 0x1fd   :  { %v152_v30 = vadd.f32 %v145_v29, %v61_v27  ;;  %v147_v31 = vpop.f32.mrb[1].mxu0 }
 0x1fe   :  { %v153_v32 = vadd.f32 %v147_v31, %v62_v28  ;;  %v149_v33 = vpop.f32.mrb[2].mxu0 }
 0x1ff   :  { %v744_v34 = vmul.f32 -1.442695, %v152_v30  ;;  %v150_v35 = vpop.f32.mrb[3].mxu0 }
 0x200   :  { %v745_v36 = vmul.f32 -1.442695, %v153_v32 }
 0x201   :  { %843 = vpow2.f32 %v744_v34 }
 0x202   :  { %845 = vpow2.f32 %v745_v36 }
 0x20b   :  { %v844_v37 = vpop.eup %843 }
 0x20c   :  { %v846_v38 = vpop.eup %845  ;;  %v160_v40 = vadd.f32 1.0, %v844_v37 }
 0x20d   :  { %v161_v39 = vadd.f32 1.0, %v846_v38 }
 0x20f   :  { %847 = vrcp.f32 %v161_v39 }
 0x210   :  { %849 = vrcp.f32 %v160_v40 }
 0x219   :  { %v848_v41 = vpop.eup %847 }
 0x21a   :  { %v166_v42 = vmul.f32 2.0, %v848_v41  ;;  %v850_v44 = vpop.eup %849 }
 0x21b   :  { %v172_v47 = vmul.f32 %v850_v44, %v170_v46 }
 0x21c   :  { %v746_v43 = vadd.f32 -1.0, %v166_v42 }
 0x21e   :  { %v173_v45 = vmul.f32 %v850_v44, %v746_v43 }
 0x220   :  { %175 = vrot.lane.b32.xlu1 %v173_v45, %s940_s0 }
 0x292   :  { %v176_v48 = vpop.permute.xlu1 %175 }
 0x293   :  { %v178_v49 = vadd.f32 %v176_v48, %v172_v47 }
 0x295   :  { %851 = vtanh.f32 %v178_v49 }
 0x29f   :  { %v852_v50 = vpop.eup %851 }
 0x2a0   :  { %v180_v51 = vmul.f32 %v852_v50, %v848_v41  ;;  %v334_v50 = vld [vmem:[#allocation2 + $0x40] sm:$0xff] }
 0x2a2   :  { %v184_v52 = vpack.c.bf16 %v180_v51, %v180_v51  ;;  %v335_v51 = vld [vmem:[#allocation2 + $0x48] sm:$0xff] }
 0x2a4   :  { %186 = vrot.lane.b32.xlu0 %v184_v52, %s940_s0 }
 0x316   :  { %v187_v53 = vpop.permute.xlu0 %186 }
 0x317   :  { %747 = vmatmul.mubr.msk.bf16.vlgmr.msra.gmra.mrb[0].mxu1 %vm107_vm0, %v187_v53 }
 0x318   :  { %344 = vmatpush1.bf16.msra.mxu1 %v986_v14  ;;  %375 = vmatprep.mubr.bf16.mxu1 %v941_v17 }
 0x319   :  { %345 = vmatprep.subr.bf16.mxu1 %v991_v15 }
 0x31c   :  { %346 = vmatpush1.bf16.msra.mxu1 %v999_v16 }
 0x31d   :  { %347 = vmatprep.subr.bf16.mxu1 %v1006_v18 }
 0x320   :  { %348 = vmatpush1.bf16.msra.mxu1 %v1015_v19 }
 0x321   :  { %349 = vmatprep.subr.bf16.mxu1 %v1021_v21 }
 0x324   :  { %350 = vmatpush1.bf16.msra.mxu1 %v1030_v22 }
 0x325   :  { %495 = vmatprep.subr.bf16.mxu1 %v981_v13 }
 0x3ea   :  { %v225_v56 = vpop.f32.mrb[0].mxu1 }
 0x3eb   :  { %v232_v57 = vadd.f32 %v225_v56, %v182_v54  ;;  %v227_v58 = vpop.f32.mrb[1].mxu1 }
 0x3ec   :  { %v233_v59 = vadd.f32 %v227_v58, %v183_v55  ;;  %v229_v60 = vpop.f32.mrb[2].mxu1 }
 0x3ed   :  { %v748_v61 = vmul.f32 -1.442695, %v232_v57  ;;  %v230_v62 = vpop.f32.mrb[3].mxu1 }
 0x3ee   :  { %v749_v63 = vmul.f32 -1.442695, %v233_v59 }
 0x3ef   :  { %853 = vpow2.f32 %v748_v61 }
 0x3f0   :  { %855 = vpow2.f32 %v749_v63 }
 0x3f9   :  { %v854_v0 = vpop.eup %853 }
 0x3fa   :  { %v856_v1 = vpop.eup %855  ;;  %v240_v3 = vadd.f32 1.0, %v854_v0 }
 0x3fb   :  { %v241_v2 = vadd.f32 1.0, %v856_v1 }
 0x3fd   :  { %857 = vrcp.f32 %v241_v2 }
 0x3fe   :  { %859 = vrcp.f32 %v240_v3 }
 0x407   :  { %v858_v4 = vpop.eup %857 }
 0x408   :  { %v246_v5 = vmul.f32 2.0, %v858_v4  ;;  %v860_v7 = vpop.eup %859 }
 0x409   :  { %v248_v9 = vmul.f32 %v860_v7, %v178_v49 }
 0x40a   :  { %v750_v6 = vadd.f32 -1.0, %v246_v5 }
 0x40c   :  { %v249_v8 = vmul.f32 %v860_v7, %v750_v6 }
 0x40e   :  { %251 = vrot.lane.b32.xlu1 %v249_v8, %s940_s0 }
 0x480   :  { %v252_v10 = vpop.permute.xlu1 %251 }
 0x481   :  { %v254_v11 = vadd.f32 %v252_v10, %v248_v9 }
 0x483   :  { %861 = vtanh.f32 %v254_v11 }
 0x48d   :  { %v862_v12 = vpop.eup %861 }
 0x48e   :  { %v256_v20 = vmul.f32 %v862_v12, %v858_v4  ;;  %v410_v12 = vld [vmem:[#allocation2 + $0x50] sm:$0xff] }
 0x490   :  { %v260_v23 = vpack.c.bf16 %v256_v20, %v256_v20  ;;  %v411_v20 = vld [vmem:[#allocation2 + $0x58] sm:$0xff] }
 0x492   :  { %262 = vrot.lane.b32.xlu0 %v260_v23, %s940_s0 }
 0x504   :  { %v263_v24 = vpop.permute.xlu0 %262 }
 0x505   :  { %751 = vmatmul.mubr.msk.bf16.vlgmr.msra.gmra.mrb[4].mxu0 %vm107_vm0, %v263_v24 }
 0x506   :  { %420 = vmatpush1.bf16.msra.mxu0 %v986_v14  ;;  %451 = vmatprep.mubr.bf16.mxu0 %v941_v17 }
 0x507   :  { %421 = vmatprep.subr.bf16.mxu0 %v991_v15 }
 0x50a   :  { %422 = vmatpush1.bf16.msra.mxu0 %v999_v16 }
 0x50b   :  { %423 = vmatprep.subr.bf16.mxu0 %v1006_v18 }
 0x50e   :  { %424 = vmatpush1.bf16.msra.mxu0 %v1015_v19 }
 0x50f   :  { %425 = vmatprep.subr.bf16.mxu0 %v1021_v21 }
 0x512   :  { %426 = vmatpush1.bf16.msra.mxu0 %v1030_v22 }
 0x513   :  { %571 = vmatprep.subr.bf16.mxu0 %v981_v13 }
 0x5d8   :  { %v301_v27 = vpop.f32.mrb[4].mxu0 }
 0x5d9   :  { %v308_v28 = vadd.f32 %v301_v27, %v258_v25  ;;  %v303_v29 = vpop.f32.mrb[5].mxu0 }
 0x5da   :  { %v309_v30 = vadd.f32 %v303_v29, %v259_v26  ;;  %v305_v31 = vpop.f32.mrb[6].mxu0 }
 0x5db   :  { %v752_v32 = vmul.f32 -1.442695, %v308_v28  ;;  %v306_v33 = vpop.f32.mrb[7].mxu0 }
 0x5dc   :  { %v753_v34 = vmul.f32 -1.442695, %v309_v30 }
 0x5dd   :  { %863 = vpow2.f32 %v752_v32 }
 0x5de   :  { %865 = vpow2.f32 %v753_v34 }
 0x5e7   :  { %v864_v35 = vpop.eup %863 }
 0x5e8   :  { %v866_v36 = vpop.eup %865  ;;  %v316_v38 = vadd.f32 1.0, %v864_v35 }
 0x5e9   :  { %v317_v37 = vadd.f32 1.0, %v866_v36 }
 0x5eb   :  { %867 = vrcp.f32 %v317_v37 }
 0x5ec   :  { %869 = vrcp.f32 %v316_v38 }
 0x5f5   :  { %v868_v39 = vpop.eup %867 }
 0x5f6   :  { %v322_v13 = vmul.f32 2.0, %v868_v39  ;;  %v870_v41 = vpop.eup %869 }
 0x5f7   :  { %v324_v43 = vmul.f32 %v870_v41, %v254_v11 }
 0x5f8   :  { %v754_v40 = vadd.f32 -1.0, %v322_v13  ;;  %v487_v13 = vld [vmem:[#allocation2 + $0x68] sm:$0xff] }
 0x5fa   :  { %v325_v42 = vmul.f32 %v870_v41, %v754_v40 }
 0x5fc   :  { %327 = vrot.lane.b32.xlu1 %v325_v42, %s940_s0 }
 0x66e   :  { %v328_v44 = vpop.permute.xlu1 %327 }
 0x66f   :  { %v330_v45 = vadd.f32 %v328_v44, %v324_v43 }
 0x671   :  { %871 = vtanh.f32 %v330_v45 }
 0x67b   :  { %v872_v46 = vpop.eup %871 }
 0x67c   :  { %v332_v47 = vmul.f32 %v872_v46, %v868_v39  ;;  %v486_v39 = vld [vmem:[#allocation2 + $0x60] sm:$0xff] }
 0x67e   :  { %v336_v48 = vpack.c.bf16 %v332_v47, %v332_v47 }
 0x680   :  { %338 = vrot.lane.b32.xlu0 %v336_v48, %s940_s0 }
 0x6f2   :  { %v339_v49 = vpop.permute.xlu0 %338 }
 0x6f3   :  { %755 = vmatmul.mubr.msk.bf16.vlgmr.msra.gmra.mrb[4].mxu1 %vm107_vm0, %v339_v49 }
 0x6f4   :  { %496 = vmatpush1.bf16.msra.mxu1 %v986_v14  ;;  %527 = vmatprep.mubr.bf16.mxu1 %v941_v17 }
 0x6f5   :  { %497 = vmatprep.subr.bf16.mxu1 %v991_v15 }
 0x6f8   :  { %498 = vmatpush1.bf16.msra.mxu1 %v999_v16 }
 0x6f9   :  { %499 = vmatprep.subr.bf16.mxu1 %v1006_v18 }
 0x6fc   :  { %500 = vmatpush1.bf16.msra.mxu1 %v1015_v19 }
 0x6fd   :  { %501 = vmatprep.subr.bf16.mxu1 %v1021_v21 }
 0x700   :  { %502 = vmatpush1.bf16.msra.mxu1 %v1030_v22 }
 0x7c6   :  { %v377_v52 = vpop.f32.mrb[4].mxu1 }
 0x7c7   :  { %v384_v53 = vadd.f32 %v377_v52, %v334_v50  ;;  %v379_v54 = vpop.f32.mrb[5].mxu1 }
 0x7c8   :  { %v385_v55 = vadd.f32 %v379_v54, %v335_v51  ;;  %v381_v56 = vpop.f32.mrb[6].mxu1 }
 0x7c9   :  { %v756_v57 = vmul.f32 -1.442695, %v384_v53  ;;  %v382_v58 = vpop.f32.mrb[7].mxu1 }
 0x7ca   :  { %v757_v59 = vmul.f32 -1.442695, %v385_v55 }
 0x7cb   :  { %873 = vpow2.f32 %v756_v57 }
 0x7cc   :  { %875 = vpow2.f32 %v757_v59 }
 0x7d5   :  { %v874_v60 = vpop.eup %873 }
 0x7d6   :  { %v876_v61 = vpop.eup %875  ;;  %v392_v63 = vadd.f32 1.0, %v874_v60 }
 0x7d7   :  { %v393_v62 = vadd.f32 1.0, %v876_v61 }
 0x7d9   :  { %877 = vrcp.f32 %v393_v62 }
 0x7da   :  { %879 = vrcp.f32 %v392_v63 }
 0x7e3   :  { %v878_v0 = vpop.eup %877 }
 0x7e4   :  { %v398_v1 = vmul.f32 2.0, %v878_v0  ;;  %v880_v3 = vpop.eup %879 }
 0x7e5   :  { %v400_v5 = vmul.f32 %v880_v3, %v330_v45 }
 0x7e6   :  { %v758_v2 = vadd.f32 -1.0, %v398_v1  ;;  %v563_v1 = vld [vmem:[#allocation2 + $0x78] sm:$0xff] }
 0x7e8   :  { %v401_v4 = vmul.f32 %v880_v3, %v758_v2 }
 0x7ea   :  { %403 = vrot.lane.b32.xlu1 %v401_v4, %s940_s0 }
 0x85c   :  { %v404_v6 = vpop.permute.xlu1 %403 }
 0x85d   :  { %v406_v7 = vadd.f32 %v404_v6, %v400_v5 }
 0x85f   :  { %881 = vtanh.f32 %v406_v7 }
 0x869   :  { %v882_v8 = vpop.eup %881 }
 0x86a   :  { %v408_v9 = vmul.f32 %v882_v8, %v878_v0  ;;  %v562_v0 = vld [vmem:[#allocation2 + $0x70] sm:$0xff] }
 0x86c   :  { %v412_v10 = vpack.c.bf16 %v408_v9, %v408_v9 }
 0x86e   :  { %414 = vrot.lane.b32.xlu0 %v412_v10, %s940_s0 }
 0x8e0   :  { %v415_v11 = vpop.permute.xlu0 %414 }
 0x8e1   :  { %759 = vmatmul.mubr.msk.bf16.vlgmr.msra.gmra.mrb[8].mxu0 %vm107_vm0, %v415_v11 }
 0x8e2   :  { %572 = vmatpush1.bf16.msra.mxu0 %v986_v14  ;;  %603 = vmatprep.mubr.bf16.mxu0 %v941_v17 }
 0x8e3   :  { %573 = vmatprep.subr.bf16.mxu0 %v991_v15 }
 0x8e6   :  { %574 = vmatpush1.bf16.msra.mxu0 %v999_v16 }
 0x8e7   :  { %575 = vmatprep.subr.bf16.mxu0 %v1006_v18 }
 0x8ea   :  { %576 = vmatpush1.bf16.msra.mxu0 %v1015_v19 }
 0x8eb   :  { %577 = vmatprep.subr.bf16.mxu0 %v1021_v21 }
 0x8ee   :  { %578 = vmatpush1.bf16.msra.mxu0 %v1030_v22 }
 0x9b4   :  { %v453_v23 = vpop.f32.mrb[8].mxu0 }
 0x9b5   :  { %v460_v24 = vadd.f32 %v453_v23, %v410_v12  ;;  %v455_v25 = vpop.f32.mrb[9].mxu0 }
 0x9b6   :  { %v461_v14 = vadd.f32 %v455_v25, %v411_v20  ;;  %v457_v26 = vpop.f32.mrb[10].mxu0 }
 0x9b7   :  { %v760_v17 = vmul.f32 -1.442695, %v460_v24  ;;  %v458_v27 = vpop.f32.mrb[11].mxu0 }
 0x9b8   :  { %v761_v15 = vmul.f32 -1.442695, %v461_v14  ;;  %v638_v27 = vld [vmem:[%s1137_s2 + $0x8] sm:$0xff] }
 0x9b9   :  { %883 = vpow2.f32 %v760_v17  ;;  %v637_v17 = vld [vmem:[%s1137_s2] sm:$0xff] }
 0x9ba   :  { %885 = vpow2.f32 %v761_v15  ;;  %v639_v15 = vld [vmem:[%s1137_s2 + $0x10] sm:$0xff] }
 0x9c3   :  { %v884_v16 = vpop.eup %883 }
 0x9c4   :  { %v886_v18 = vpop.eup %885  ;;  %v468_v19 = vadd.f32 1.0, %v884_v16  ;;  %v942_v16 = vmov 0.0|0.0  }
 0x9c5   :  { %v469_v28 = vadd.f32 1.0, %v886_v18  ;;  %801 = vmatprep.subr.bf16.mxu1 %v942_v16  ;;  %v802_v18 = vpack.c.bf16 %v638_v27, %v637_v17 }
 0x9c7   :  { %887 = vrcp.f32 %v469_v28  ;;  %v640_v28 = vld [vmem:[%s1137_s2 + $0x18] sm:$0xff] }
 0x9c8   :  { %889 = vrcp.f32 %v468_v19  ;;  %v944_v19 = vmov 0.0  }
 0x9d1   :  { %v888_v21 = vpop.eup %887 }
 0x9d2   :  { %v474_v22 = vmul.f32 2.0, %v888_v21  ;;  %v890_v30 = vpop.eup %889 }
 0x9d3   :  { %v476_v32 = vmul.f32 %v890_v30, %v406_v7 }
 0x9d4   :  { %v762_v29 = vadd.f32 -1.0, %v474_v22  ;;  %v641_v22 = vld [vmem:[%s1137_s2 + $0x20] sm:$0xff] }
 0x9d6   :  { %v477_v31 = vmul.f32 %v890_v30, %v762_v29  ;;  %v642_v29 = vld [vmem:[%s1137_s2 + $0x28] sm:$0xff] }
 0x9d7   :  { %v808_v30 = vpack.c.bf16 %v642_v29, %v641_v22 }
 0x9d8   :  { %479 = vrot.lane.b32.xlu1 %v477_v31, %s940_s0  ;;  %v643_v31 = vld [vmem:[%s1137_s2 + $0x30] sm:$0xff] }
 0xa4a   :  { %v480_v33 = vpop.permute.xlu1 %479 }
 0xa4b   :  { %v482_v34 = vadd.f32 %v480_v33, %v476_v32  ;;  %v644_v32 = vld [vmem:[%s1137_s2 + $0x38] sm:$0xff] }
 0xa4c   :  { %v811_v33 = vpack.c.bf16 %v644_v32, %v643_v31 }
 0xa4d   :  { %891 = vtanh.f32 %v482_v34 }
 0xa57   :  { %v892_v35 = vpop.eup %891 }
 0xa58   :  { %v484_v36 = vmul.f32 %v892_v35, %v888_v21  ;;  %v805_v21 = vpack.c.bf16 %v640_v28, %v639_v15 }
 0xa5a   :  { %v488_v37 = vpack.c.bf16 %v484_v36, %v484_v36 }
 0xa5c   :  { %490 = vrot.lane.b32.xlu0 %v488_v37, %s940_s0 }
 0xace   :  { %v491_v38 = vpop.permute.xlu0 %490 }
 0xacf   :  { %763 = vmatmul.mubr.msk.bf16.vlgmr.msra.gmra.mrb[8].mxu1 %vm107_vm0, %v491_v38 }
 0xad0   :  { %798 = vmatprep.mubr.msk.f32.mxu1 %vm943_vm1, %v944_v19  ;;  %803 = vmatpush3.bf16.msra.mxu1 %v802_v18 }
 0xad1   :  { %804 = vmatprep.subr.bf16.mxu1 %v942_v16 }
 0xad4   :  { %806 = vmatpush3.bf16.msra.mxu1 %v805_v21 }
 0xad5   :  { %807 = vmatprep.subr.bf16.mxu1 %v942_v16 }
 0xad8   :  { %809 = vmatpush3.bf16.msra.mxu1 %v808_v30 }
 0xad9   :  { %810 = vmatprep.subr.bf16.mxu1 %v942_v16 }
 0xadc   :  { %812 = vmatpush3.bf16.msra.mxu1 %v811_v33 }
 0xba2   :  { %v529_v40 = vpop.f32.mrb[8].mxu1 }
 0xba3   :  { %v536_v41 = vadd.f32 %v529_v40, %v486_v39  ;;  %v531_v42 = vpop.f32.mrb[9].mxu1 }
 0xba4   :  { %v537_v43 = vadd.f32 %v531_v42, %v487_v13  ;;  %v533_v44 = vpop.f32.mrb[10].mxu1  ;;  %v771_v13 = vld [vmem:[%s1137_s2 + $0x40] ss:$0 sm:$0xff] }
 0xba5   :  { %v764_v45 = vmul.f32 -1.442695, %v536_v41  ;;  %v534_v46 = vpop.f32.mrb[11].mxu1 }
 0xba6   :  { %v765_v47 = vmul.f32 -1.442695, %v537_v43 }
 0xba7   :  { %893 = vpow2.f32 %v764_v45 }
 0xba8   :  { %895 = vpow2.f32 %v765_v47 }
 0xbb1   :  { %v894_v48 = vpop.eup %893 }
 0xbb2   :  { %v896_v49 = vpop.eup %895  ;;  %v544_v51 = vadd.f32 1.0, %v894_v48 }
 0xbb3   :  { %v545_v50 = vadd.f32 1.0, %v896_v49 }
 0xbb5   :  { %897 = vrcp.f32 %v545_v50 }
 0xbb6   :  { %899 = vrcp.f32 %v544_v51 }
 0xbbf   :  { %v898_v52 = vpop.eup %897 }
 0xbc0   :  { %v550_v53 = vmul.f32 2.0, %v898_v52  ;;  %v900_v55 = vpop.eup %899 }
 0xbc1   :  { %v552_v57 = vmul.f32 %v900_v55, %v482_v34 }
 0xbc2   :  { %v766_v54 = vadd.f32 -1.0, %v550_v53 }
 0xbc4   :  { %v553_v56 = vmul.f32 %v900_v55, %v766_v54 }
 0xbc6   :  { %555 = vrot.lane.b32.xlu1 %v553_v56, %s940_s0 }
 0xc38   :  { %v556_v58 = vpop.permute.xlu1 %555 }
 0xc39   :  { %v558_v59 = vadd.f32 %v556_v58, %v552_v57 }
 0xc3b   :  { %901 = vtanh.f32 %v558_v59 }
 0xc45   :  { %v902_v60 = vpop.eup %901 }
 0xc46   :  { %v560_v61 = vmul.f32 %v902_v60, %v898_v52 }
 0xc48   :  { %v564_v62 = vpack.c.bf16 %v560_v61, %v560_v61 }
 0xc4a   :  { %566 = vrot.lane.b32.xlu0 %v564_v62, %s940_s0 }
 0xcbc   :  { %v567_v63 = vpop.permute.xlu0 %566 }
 0xcbd   :  { %767 = vmatmul.mubr.msk.bf16.vlgmr.msra.gmra.mrb[12].mxu0 %vm107_vm0, %v567_v63 }
 0xd90   :  { %v605_v2 = vpop.f32.mrb[12].mxu0 }
 0xd91   :  { %v612_v3 = vadd.f32 %v605_v2, %v562_v0  ;;  %v607_v4 = vpop.f32.mrb[13].mxu0 }
 0xd92   :  { %v613_v5 = vadd.f32 %v607_v4, %v563_v1  ;;  %v609_v6 = vpop.f32.mrb[14].mxu0 }
 0xd93   :  { %v768_v7 = vmul.f32 -1.442695, %v612_v3  ;;  %v610_v8 = vpop.f32.mrb[15].mxu0 }
 0xd94   :  { %v769_v9 = vmul.f32 -1.442695, %v613_v5 }
 0xd95   :  { %903 = vpow2.f32 %v768_v7 }
 0xd96   :  { %905 = vpow2.f32 %v769_v9 }
 0xd9f   :  { %v904_v10 = vpop.eup %903 }
 0xda0   :  { %v906_v11 = vpop.eup %905  ;;  %v620_v20 = vadd.f32 1.0, %v904_v10 }
 0xda1   :  { %v621_v12 = vadd.f32 1.0, %v906_v11 }
 0xda3   :  { %907 = vrcp.f32 %v621_v12 }
 0xda4   :  { %909 = vrcp.f32 %v620_v20 }
 0xdad   :  { %v908_v23 = vpop.eup %907 }
 0xdae   :  { %v626_v24 = vmul.f32 2.0, %v908_v23  ;;  %v910_v14 = vpop.eup %909 }
 0xdaf   :  { %v628_v34 = vmul.f32 %v910_v14, %v558_v59 }
 0xdb0   :  { %v770_v25 = vadd.f32 -1.0, %v626_v24 }
 0xdb2   :  { %v629_v26 = vmul.f32 %v910_v14, %v770_v25 }
 0xdb4   :  { %631 = vrot.lane.b32.xlu1 %v629_v26, %s940_s0 }
 0xe26   :  { %v632_v35 = vpop.permute.xlu1 %631 }
 0xe27   :  { %v634_v36 = vadd.f32 %v632_v35, %v628_v34 }
 0xe29   :  { %911 = vtanh.f32 %v634_v36 }
 0xe33   :  { %v912_v37 = vpop.eup %911 }
 0xe34   :  { %v636_v38 = vmul.f32 %v912_v37, %v908_v23 }
 0xe36   :  { %651 = vrot.lane.b32.xlu0 %v636_v38, %s940_s0 }
 0xea8   :  { %v652_v39 = vpop.permute.xlu0 %651 }
 0xea9   :  { %799 = vmatmul.mubr.msk.f32.vlgmr.msra.gmra.mrb[12].mxu1 %vm107_vm0, %v652_v39 }
 0xf7c   :  { %v721_v40 = vpop.f32.mrb[12].mxu1 }
 0xf7d   :  { %v722_v41 = vadd.f32 %v771_v13, %v721_v40  ;;  %v800_v42 = vpop.f32.mrb[13].mxu1 }
 0xf7f   :  { %726 = vst.msk [vmem:[%s1138_s3] sm:$0xff] %vm725_vm2, %v722_v41 }
 0xf80   :  { %731 = vsyncpa [#allocation3], 1 }

</bundles_post_ra>
